<compile_context>
chip_gen: v7x
topology: tpu7x:2x2x1
jax: 0.10.0
libtpu: 0.0.40
codegen_flags: <defaults>
</compile_context>

<pallas_src>
import functools

import jax
import jax.numpy as jnp
import numpy as np
from jax.experimental import pallas as pl
from jax.experimental.pallas import tpu as pltpu


def _covreg_loss_kernel(x_ref, y_ref, w_ref, out_ref, acc_ref, reg_ref, *,
                        reg, inv_total, inv_offdiag, inv_n, inv_nm1):
    i = pl.program_id(0)

    # ---- step 0: init accumulator and do all the W / covariance work ------
    # Running the MXU path on the first step lets it overlap the pipelined
    # DMA prefetch of subsequent x / y tiles; only two scalars survive.
    @pl.when(i == 0)
    def _():
        acc_ref[...] = jnp.zeros_like(acc_ref)

        w = w_ref[...].astype(jnp.float32)
        # Native transposed-RHS MXU matmul, f32 accumulation.
        # TODO(synk): bf16 MXU inputs + column-tiled |cov| reduction for large n.
        cov = pl.dot(w, w, trans_b=True)                         # (n, n)
        nn = cov.shape[0]
        rows_id = jax.lax.broadcasted_iota(jnp.int32, (nn, nn), 0)
        cols_id = jax.lax.broadcasted_iota(jnp.int32, (nn, nn), 1)
        # Diagonal extracted from the same MXU result as sum|cov| so the
        # off-diagonal subtraction is precision-consistent.
        diag = jnp.sum(jnp.where(rows_id == cols_id, cov, 0.0),
                       axis=1, keepdims=True)                    # (n, 1)
        sum_abs_cov = jnp.sum(jnp.abs(cov))
        sum_abs_diag = jnp.sum(jnp.abs(diag))
        off_diag = (sum_abs_cov - sum_abs_diag) * inv_offdiag
        mean_d = jnp.sum(diag) * inv_n
        var_d = jnp.sum((diag - mean_d) ** 2) * inv_nm1
        reg_ref[0] = jnp.float32(reg) * (jnp.float32(0.1) * var_d + off_diag)

    # ---- per-tile MSE partial sum (mem-bound streaming path) --------------
    # Fold the tile into the (8,128) accumulator with pure full-vreg VPU adds;
    # cross-sublane / cross-lane reduces are deferred to the finalize step.
    diff = x_ref[...].astype(jnp.float32) - y_ref[...].astype(jnp.float32)
    sq = diff * diff
    acc_ref[...] += jnp.sum(sq.reshape(-1, 8, 128), axis=0)

    # ---- finalize: one reduce + scalar combine -----------------------------
    @pl.when(i == pl.num_programs(0) - 1)
    def _():
        mse = jnp.sum(acc_ref[...]) * inv_total
        out_ref[0, 0] = reg_ref[0] + mse


def _round_up(a, b):
    return ((a + b - 1) // b) * b


# ~2 MiB per input per pipeline buffer (4096 rows f32, 8192 rows bf16).
_TARGET_TILE_BYTES = 2 << 20


def covariance_reg_loss(x, y, w, reg):
    """x, y: prediction / target tensors (any shape); w: first param of net, (n, k)."""
    total = int(np.prod(x.shape))
    itemsize = jnp.dtype(x.dtype).itemsize

    # Lane-dense 2D slab (rows, 128), zero-padded to a whole number of tiles.
    rows = -(-total // 128)                                      # cdiv
    target_rows = max(8, (_TARGET_TILE_BYTES // (128 * itemsize)) // 8 * 8)
    tile_r = min(target_rows, _round_up(rows, 8))
    rows_padded = _round_up(rows, tile_r)
    padded_total = rows_padded * 128

    xf = x.reshape(-1)
    yf = y.reshape(-1)
    if padded_total != total:
        pad = padded_total - total
        # Identical zero padding on both inputs -> diff == 0 there (no bias);
        # inv_total below divides by the true element count.
        xf = jnp.pad(xf, (0, pad))
        yf = jnp.pad(yf, (0, pad))
    x2d = xf.reshape(rows_padded, 128)
    y2d = yf.reshape(rows_padded, 128)

    grid = (rows_padded // tile_r,)

    n, k = int(w.shape[0]), int(w.shape[1])
    kernel = functools.partial(
        _covreg_loss_kernel,
        reg=float(reg),
        inv_total=1.0 / float(total),
        inv_offdiag=1.0 / float(n * (n - 1)),
        inv_n=1.0 / float(n),
        inv_nm1=1.0 / float(n - 1),
    )

    # VMEM budget: 2 inputs x 2 pipeline buffers x tile, plus W / cov / scratch,
    # plus slack.  Capped so it also fits v7x's 64 MiB physical VMEM.
    tile_bytes = tile_r * 128 * itemsize
    vmem_limit = 4 * tile_bytes + 2 * (n * k * 4 + n * n * 4) + (4 << 20)
    vmem_limit = int(min(max(vmem_limit, 16 << 20), 56 << 20))

    out = pl.pallas_call(
        kernel,
        out_shape=jax.ShapeDtypeStruct((1, 1), jnp.float32),
        grid_spec=pltpu.PrefetchScalarGridSpec(
            num_scalar_prefetch=0,
            grid=grid,
            in_specs=[
                pl.BlockSpec((tile_r, 128), lambda i: (i, 0)),   # x row tiles
                pl.BlockSpec((tile_r, 128), lambda i: (i, 0)),   # y row tiles
                # Whole-array resident in VMEM: single copy, not part of the
                # revolving pipeline buffers (no double buffer for W).
                pl.BlockSpec(memory_space=pltpu.VMEM),
            ],
            out_specs=pl.BlockSpec(memory_space=pltpu.SMEM),     # scalar result
            scratch_shapes=[
                pltpu.VMEM((8, 128), jnp.float32),               # MSE vreg accumulator
                pltpu.SMEM((1,), jnp.float32),                   # reg-term scalar
            ],
        ),
        compiler_params=pltpu.CompilerParams(
            dimension_semantics=("arbitrary",),  # sequential reduction axis
            vmem_limit_bytes=vmem_limit,
        ),
    )(x2d, y2d, w)
    return out[0, 0]


def _reference(x, y, w, reg):
    mse = jnp.mean((x.astype(jnp.float32) - y.astype(jnp.float32)) ** 2)
    wf = w.astype(jnp.float32)
    cov = wf @ wf.T
    diag = jnp.diagonal(cov)
    n = w.shape[0]
    off_diag = (jnp.sum(jnp.abs(cov)) - jnp.sum(jnp.abs(diag))) / (n * (n - 1))
    var_d = jnp.var(diag, ddof=1)
    return reg * (0.1 * var_d + off_diag) + mse


if __name__ == "__main__":
    key = jax.random.PRNGKey(0)
    kx, ky, kw = jax.random.split(key, 3)

    # Small shapes consistent with the module's forward:
    #   x, y : network output / target, NCHW = (2, 4, 16, 16)
    #   W    : first parameter of `net` -> a (32, 64) linear weight.
    x = jax.random.normal(kx, (2, 4, 16, 16), dtype=jnp.float32)
    y = jax.random.normal(ky, (2, 4, 16, 16), dtype=jnp.float32)
    w = jax.random.normal(kw, (32, 64), dtype=jnp.float32) * 0.1
    reg = 0.5

    loss = covariance_reg_loss(x, y, w, reg)
    jax.block_until_ready(loss)

    ref = _reference(x, y, w, reg)
    np.testing.assert_allclose(np.asarray(loss), np.asarray(ref), rtol=1e-5, atol=1e-5)

    print("KERNEL_OK")
</pallas_src>

<mosaic_0001>
module attributes {stable_mosaic.version = 11 : i64} {
  func.func @_covreg_loss_kernel(%arg0: i32, %arg1: memref<16x128xf32, #tpu.memory_space<vmem>>, %arg2: memref<16x128xf32, #tpu.memory_space<vmem>>, %arg3: memref<32x64xf32, #tpu.memory_space<vmem>>, %arg4: memref<1x1xf32, #tpu.memory_space<smem>>, %arg5: memref<8x128xf32, #tpu.memory_space<vmem>>, %arg6: memref<1xf32, #tpu.memory_space<smem>>) attributes {dimension_semantics = [#tpu.dimension_semantics<arbitrary>], iteration_bounds = array<i64: 1>, scalar_prefetch = 0 : i64, scratch_operands = 2 : i64, tpu.core_type = #tpu.core_type<tc>, window_params = [{transform_indices = @transform_0, window_bounds = array<i64: 16, 128>}, {transform_indices = @transform_1, window_bounds = array<i64: 16, 128>}, {pipeline_mode = #tpu.pipeline_mode<synchronous>, transform_indices = @transform_2, window_bounds = array<i64: 32, 64>}, {transform_indices = @transform_3, window_bounds = array<i64: 1, 1>}]} {
    %c0_i32 = arith.constant 0 : i32
    %0 = arith.cmpi eq, %arg0, %c0_i32 : i32
    %1 = arith.extui %0 : i1 to i32
    %c0_i32_0 = arith.constant 0 : i32
    %2 = arith.cmpi ne, %1, %c0_i32_0 : i32
    scf.if %2 {
      %cst_10 = arith.constant 0.000000e+00 : f32
      %15 = vector.broadcast %cst_10 : f32 to vector<8x128xf32>
      %c0_11 = arith.constant 0 : index
      %c0_12 = arith.constant 0 : index
      %16 = vector.load %arg5[%c0_11, %c0_12] : memref<8x128xf32, #tpu.memory_space<vmem>>, vector<8x128xf32>
      tpu.vector_store %arg5[%c0_11, %c0_12], %15 {strides = array<i32>} : memref<8x128xf32, #tpu.memory_space<vmem>>, vector<8x128xf32>,
      %c0_13 = arith.constant 0 : index
      %c0_14 = arith.constant 0 : index
      %17 = vector.load %arg3[%c0_13, %c0_14] : memref<32x64xf32, #tpu.memory_space<vmem>>, vector<32x64xf32>
      %cst_15 = arith.constant dense<0.000000e+00> : vector<32x32xf32>
      %18 = tpu.matmul %17, %17, %cst_15 {dimension_numbers = #tpu.dot_dimension_numbers<[1], [1], [0], [0], [0, 0, 1, 0], [], []>} : vector<32x64xf32>, vector<32x64xf32>, vector<32x32xf32> -> vector<32x32xf32>
      %19 = tpu.iota {dimensions = array<i32: 0>} : vector<32x32xi32>
      %20 = tpu.iota {dimensions = array<i32: 1>} : vector<32x32xi32>
      %21 = arith.cmpi eq, %19, %20 : vector<32x32xi32>
      %cst_16 = arith.constant 0.000000e+00 : f32
      %22 = vector.broadcast %cst_16 : f32 to vector<32x32xf32>
      %23 = arith.select %21, %18, %22 : vector<32x32xi1>, vector<32x32xf32>
      %cst_17 = arith.constant dense<0.000000e+00> : vector<32xf32>
      %24 = vector.multi_reduction <add>, %23, %cst_17 [1] : vector<32x32xf32> to vector<32xf32>
      %25 = vector.shape_cast %24 : vector<32xf32> to vector<32x1xf32>
      %26 = math.absf %18 : vector<32x32xf32>
      %27 = vector.shape_cast %26 : vector<32x32xf32> to vector<1x32x32xf32>
      %cst_18 = arith.constant dense<0.000000e+00> : vector<1xf32>
      %28 = vector.multi_reduction <add>, %27, %cst_18 [1, 2] : vector<1x32x32xf32> to vector<1xf32>
      %29 = vector.shape_cast %28 : vector<1xf32> to vector<1x1x1xf32>
      %30 = vector.extract %29[0, 0, 0] : f32 from vector<1x1x1xf32>
      %31 = math.absf %25 : vector<32x1xf32>
      %32 = vector.shape_cast %31 : vector<32x1xf32> to vector<1x32x1xf32>
      %cst_19 = arith.constant dense<0.000000e+00> : vector<1xf32>
      %33 = vector.multi_reduction <add>, %32, %cst_19 [1, 2] : vector<1x32x1xf32> to vector<1xf32>
      %34 = vector.shape_cast %33 : vector<1xf32> to vector<1x1x1xf32>
      %35 = vector.extract %34[0, 0, 0] : f32 from vector<1x1x1xf32>
      %36 = arith.subf %30, %35 : f32
      %cst_20 = arith.constant 0.00100806449 : f32
      %37 = arith.mulf %36, %cst_20 : f32
      %38 = vector.shape_cast %25 : vector<32x1xf32> to vector<1x32x1xf32>
      %cst_21 = arith.constant dense<0.000000e+00> : vector<1xf32>
      %39 = vector.multi_reduction <add>, %38, %cst_21 [1, 2] : vector<1x32x1xf32> to vector<1xf32>
      %40 = vector.shape_cast %39 : vector<1xf32> to vector<1x1x1xf32>
      %41 = vector.extract %40[0, 0, 0] : f32 from vector<1x1x1xf32>
      %cst_22 = arith.constant 3.125000e-02 : f32
      %42 = arith.mulf %41, %cst_22 : f32
      %43 = vector.broadcast %42 : f32 to vector<32x1xf32>
      %44 = arith.subf %25, %43 : vector<32x1xf32>
      %45 = arith.mulf %44, %44 : vector<32x1xf32>
      %46 = vector.shape_cast %45 : vector<32x1xf32> to vector<1x32x1xf32>
      %cst_23 = arith.constant dense<0.000000e+00> : vector<1xf32>
      %47 = vector.multi_reduction <add>, %46, %cst_23 [1, 2] : vector<1x32x1xf32> to vector<1xf32>
      %48 = vector.shape_cast %47 : vector<1xf32> to vector<1x1x1xf32>
      %49 = vector.extract %48[0, 0, 0] : f32 from vector<1x1x1xf32>
      %cst_24 = arith.constant 0.0322580636 : f32
      %50 = arith.mulf %49, %cst_24 : f32
      %cst_25 = arith.constant 1.000000e-01 : f32
      %51 = arith.mulf %cst_25, %50 : f32
      %52 = arith.addf %51, %37 : f32
      %cst_26 = arith.constant 5.000000e-01 : f32
      %53 = arith.mulf %cst_26, %52 : f32
      %c0_27 = arith.constant 0 : index
      %54 = memref.load %arg6[%c0_27] : memref<1xf32, #tpu.memory_space<smem>>
      memref.store %53, %arg6[%c0_27] : memref<1xf32, #tpu.memory_space<smem>>
    } else {
    }
    %c0 = arith.constant 0 : index
    %c0_1 = arith.constant 0 : index
    %3 = vector.load %arg1[%c0, %c0_1] : memref<16x128xf32, #tpu.memory_space<vmem>>, vector<16x128xf32>
    %c0_2 = arith.constant 0 : index
    %c0_3 = arith.constant 0 : index
    %4 = vector.load %arg2[%c0_2, %c0_3] : memref<16x128xf32, #tpu.memory_space<vmem>>, vector<16x128xf32>
    %5 = arith.subf %3, %4 : vector<16x128xf32>
    %6 = arith.mulf %5, %5 : vector<16x128xf32>
    %c0_4 = arith.constant 0 : index
    %c0_5 = arith.constant 0 : index
    %7 = vector.load %arg5[%c0_4, %c0_5] : memref<8x128xf32, #tpu.memory_space<vmem>>, vector<8x128xf32>
    %8 = vector.shape_cast %6 : vector<16x128xf32> to vector<2x8x128xf32>
    %cst = arith.constant dense<0.000000e+00> : vector<8x128xf32>
    %9 = vector.multi_reduction <add>, %8, %cst [0] : vector<2x8x128xf32> to vector<8x128xf32>
    %10 = arith.addf %7, %9 : vector<8x128xf32>
    %c0_6 = arith.constant 0 : index
    %c0_7 = arith.constant 0 : index
    %11 = vector.load %arg5[%c0_6, %c0_7] : memref<8x128xf32, #tpu.memory_space<vmem>>, vector<8x128xf32>
    tpu.vector_store %arg5[%c0_6, %c0_7], %10 {strides = array<i32>} : memref<8x128xf32, #tpu.memory_space<vmem>>, vector<8x128xf32>,
    %c0_i32_8 = arith.constant 0 : i32
    %12 = arith.cmpi eq, %arg0, %c0_i32_8 : i32
    %13 = arith.extui %12 : i1 to i32
    %c0_i32_9 = arith.constant 0 : i32
    %14 = arith.cmpi ne, %13, %c0_i32_9 : i32
    scf.if %14 {
      %c0_10 = arith.constant 0 : index
      %c0_11 = arith.constant 0 : index
      %15 = vector.load %arg5[%c0_10, %c0_11] : memref<8x128xf32, #tpu.memory_space<vmem>>, vector<8x128xf32>
      %16 = vector.shape_cast %15 : vector<8x128xf32> to vector<1x8x128xf32>
      %cst_12 = arith.constant dense<0.000000e+00> : vector<1xf32>
      %17 = vector.multi_reduction <add>, %16, %cst_12 [1, 2] : vector<1x8x128xf32> to vector<1xf32>
      %18 = vector.shape_cast %17 : vector<1xf32> to vector<1x1x1xf32>
      %19 = vector.extract %18[0, 0, 0] : f32 from vector<1x1x1xf32>
      %cst_13 = arith.constant 4.8828125E-4 : f32
      %20 = arith.mulf %19, %cst_13 : f32
      %c0_14 = arith.constant 0 : index
      %21 = memref.load %arg6[%c0_14] : memref<1xf32, #tpu.memory_space<smem>>
      %22 = arith.addf %21, %20 : f32
      %c0_15 = arith.constant 0 : index
      %c0_16 = arith.constant 0 : index
      %23 = memref.load %arg4[%c0_15, %c0_16] : memref<1x1xf32, #tpu.memory_space<smem>>
      memref.store %22, %arg4[%c0_15, %c0_16] : memref<1x1xf32, #tpu.memory_space<smem>>
    } else {
    }
    return
  }
  func.func @transform_0(%arg0: i32) -> (i32, i32) {
    %c0_i32 = arith.constant 0 : i32
    %c0_i32_0 = arith.constant 0 : i32
    return %arg0, %c0_i32 : i32, i32
  }
  func.func @transform_1(%arg0: i32) -> (i32, i32) {
    %c0_i32 = arith.constant 0 : i32
    %c0_i32_0 = arith.constant 0 : i32
    return %arg0, %c0_i32 : i32, i32
  }
  func.func @transform_2(%arg0: i32) -> (i32, i32) {
    %c0_i32 = arith.constant 0 : i32
    %c0_i32_0 = arith.constant 0 : i32
    %c0_i32_1 = arith.constant 0 : i32
    return %c0_i32, %c0_i32_0 : i32, i32
  }
  func.func @transform_3(%arg0: i32) -> (i32, i32) {
    %c0_i32 = arith.constant 0 : i32
    %c0_i32_0 = arith.constant 0 : i32
    %c0_i32_1 = arith.constant 0 : i32
    return %c0_i32, %c0_i32_0 : i32, i32
  }
}

</mosaic_0001>

<bundles_post_ra>
// kernel: tpu_custom_call.1
= control target key start
LH: loop header
LB: loop body
LE: loop exit
PB: predicated region body
PF: predicated region fallthrough
CT: control target
= control target key end

     0   :  { %8 = vsyncpa [#allocation5], 0  ;;  %s631_s0 = inlined_call_operand.hbm [shape: f32[16,128], index: 0, kind: input, shape index: {}]   ;;  %s632_s1 = inlined_call_operand.hbm [shape: f32[16,128], index: 1, kind: input, shape index: {}]   ;;  %s633_s2 = inlined_call_operand.hbm [shape: f32[32,64], index: 2, kind: input, shape index: {}]   ;;  %s634_s3 = inlined_call_operand.hbm [shape: f32[1,1], index: 3, kind: output, shape index: {}]  }
   0x1   :  { %9 = vsyncpa [#allocation8], 0 }
   0x2   :  { %10 = vsyncpa [#allocation6], 0  ;;  %s471_s12 = smov [#allocation7]   ;;  %s472_s14 = smov [#allocation4]  }
   0x3   :  { %s28_s13 = sshll.u32 %s471_s12, 4  ;;  %s16_s15 = sshll.u32 %s472_s14, 4  ;;  %s29_s13 = int_to_ptr.vmem [resolvable:$true] %s28_s13  ;;  %s497_s15 = int_to_ptr.vmem [resolvable:$true] %s16_s15 }
   0x4   :  { %s389_s18 = scalar_lea.hbm %s632_s1, 256 }
   0x5   :  { %p390_p0 = scmp.ne.s32.totalorder %s632_s1, %s389_s18  ;;  %p393_p1 = scmp.lt.u32.totalorder %s389_s18, %s632_s1 }
   0x7   :  { %p395_p2 = pnand %p393_p1, %p390_p0 }
   0x9   :  { %398 = shalt.err (!%p395_p2)
}
   0xa   :  { %s399_s23 = scalar_lea.vmem %s29_s13, 256  ;;  %p404_p4 = scmp.lt.s32.totalorder %s29_s13, %s29_s13 }
   0xb   :  { %p400_p3 = scmp.ne.s32.totalorder %s29_s13, %s399_s23  ;;  %p405_p5 = scmp.lt.s32.totalorder %s399_s23, %s399_s23 }
   0xd   :  { %p406_p6 = por %p405_p5, %p404_p4 }
   0xf   :  { %p407_p7 = pnand %p406_p6, %p400_p3 }
  0x11   :  { %410 = shalt.err (!%p407_p7)
}
  0x12   :  { %s473_s24 = smov 128   ;;  %s474_s25 = smov 8  }
  0x13   :  { %34 = dma.hbm_to_vmem [thread:$0]  %s632_s1, 256, %s29_s13, [#allocation8], %s473_s24, %s473_s24, %s474_s25  }
  0x14   :  { %s411_s30 = scalar_lea.hbm %s631_s0, 256 }
  0x15   :  { %p412_p8 = scmp.ne.s32.totalorder %s631_s0, %s411_s30  ;;  %p415_p9 = scmp.lt.u32.totalorder %s411_s30, %s631_s0 }
  0x17   :  { %p417_p10 = pnand %p415_p9, %p412_p8 }
  0x19   :  { %420 = shalt.err (!%p417_p10)
}
  0x1a   :  { %s421_s8 = scalar_lea.vmem %s497_s15, 256  ;;  %p426_p12 = scmp.lt.s32.totalorder %s497_s15, %s497_s15 }
  0x1b   :  { %p422_p11 = scmp.ne.s32.totalorder %s497_s15, %s421_s8  ;;  %p427_p13 = scmp.lt.s32.totalorder %s421_s8, %s421_s8 }
  0x1d   :  { %p428_p0 = por %p427_p13, %p426_p12 }
  0x1f   :  { %p429_p1 = pnand %p428_p0, %p422_p11 }
  0x21   :  { %432 = shalt.err (!%p429_p1)
}
  0x22   :  { %22 = dma.hbm_to_vmem [thread:$0]  %s631_s0, 256, %s497_s15, [#allocation5], %s473_s24, %s473_s24, %s474_s25  }
  0x23   :  { %s475_s10 = smov [#allocation9]   ;;  %s433_s14 = scalar_lea.hbm %s633_s2, 512 }
  0x24   :  { %s40_s11 = sshll.u32 %s475_s10, 4  ;;  %p434_p2 = scmp.ne.s32.totalorder %s633_s2, %s433_s14  ;;  %s41_s11 = int_to_ptr.vmem [resolvable:$true] %s40_s11 }
  0x25   :  { %p437_p3 = scmp.lt.u32.totalorder %s433_s14, %s633_s2 }
  0x27   :  { %p439_p4 = pnand %p437_p3, %p434_p2 }
  0x29   :  { %442 = shalt.err (!%p439_p4)
}
  0x2a   :  { %s443_s20 = scalar_lea.vmem %s41_s11, 512  ;;  %p448_p6 = scmp.lt.s32.totalorder %s41_s11, %s41_s11 }
  0x2b   :  { %p444_p5 = scmp.ne.s32.totalorder %s41_s11, %s443_s20  ;;  %p449_p7 = scmp.lt.s32.totalorder %s443_s20, %s443_s20 }
  0x2d   :  { %p450_p8 = por %p449_p7, %p448_p6 }
  0x2f   :  { %p451_p9 = pnand %p450_p8, %p444_p5 }
  0x31   :  { %454 = shalt.err (!%p451_p9)
}
  0x32   :  { %46 = dma.hbm_to_vmem [thread:$0]  %s633_s2, 512, %s41_s11, [#allocation8], %s473_s24, %s473_s24, %s474_s25  }
  0x33   :  { %465 = dma.done.wait [#allocation5], 256  }
  0x34   :  { %466 = vsyncadd [#allocation5], 4294967040 }
  0x35   :  { %467 = dma.done.wait [#allocation8], 768  }
  0x36   :  { %468 = vsyncadd [#allocation8], 4294966528  ;;  %vm65_vm0 = vcmask 523264   ;;  %v61_v1 = vld [vmem:[#allocation9] sm:$0xff]  ;;  %v62_v2 = vld [vmem:[#allocation9 + $0x8] sm:$0xff]  ;;  %v163_v7 = vlaneseq  ;;  %vm178_vm4 = vcmask 261120  }
  0x37   :  { %vm551_vm1 = vmpackc.low %vm65_vm0, %vm65_vm0  ;;  %v63_v3 = vld [vmem:[#allocation9 + $0x10] sm:$0xff]  ;;  %v357_v4 = vpack.c.bf16 %v62_v2, %v61_v1  ;;  %v64_v5 = vld [vmem:[#allocation9 + $0x18] sm:$0xff]  ;;  %351 = vmatprep.mubr.msk.f32.mxu0 %vm65_vm0, %v61_v1  ;;  %vm215_vm7 = vcmask 7168   ;;  %s455_s1 = scalar_lea.hbm %s634_s3, 16 }
  0x38   :  { %354 = vmatprep.mubr.msk.f32.mxu1 %vm65_vm0, %v63_v3  ;;  %v363_v6 = vpack.c.bf16 %v64_v5, %v63_v3  ;;  %v164_v8 = vshrl.u32 %v163_v7, 7  ;;  %v169_v9 = vand.u32 127, %v163_v7  ;;  %v282_v1 = vld [vmem:[#allocation4] sm:$0xff]  ;;  %v284_v3 = vld [vmem:[#allocation7] sm:$0xff]  ;;  %p456_p10 = scmp.ne.s32.totalorder %s634_s3, %s455_s1  ;;  %p459_p11 = scmp.lt.u32.totalorder %s455_s1, %s634_s3 }
  0x39   :  { %359 = vmatprep.subr.msk.bf16.mxu0 %vm551_vm1, %v357_v4  ;;  %369 = vmatprep.subr.msk.bf16.mxu1 %vm551_vm1, %v357_v4 }
  0x3a   :  { %362 = vmatpush3.bf16.xpose.msk.msra.mxu0 %vm551_vm1, %v357_v4  ;;  %371 = vmatpush3.bf16.xpose.msk.msra.mxu1 %vm551_vm1, %v357_v4  ;;  %v166_v10 = vadd.s32 16, %v164_v8  ;;  %v167_v11 = vadd.s32 24, %v164_v8  ;;  %v165_v12 = vadd.s32 8, %v164_v8  ;;  %vm170_vm2 = vcmp.eq.s32.totalorder %v164_v8, %v169_v9  ;;  %v285_v4 = vld [vmem:[#allocation7 + $0x8] sm:$0xff]  ;;  %p461_p12 = pnand %p459_p11, %p456_p10 }
  0x3b   :  { %365 = vmatprep.subr.msk.bf16.mxu0 %vm551_vm1, %v363_v6  ;;  %370 = vmatprep.subr.msk.bf16.mxu1 %vm551_vm1, %v363_v6 }
  0x3c   :  { %vm172_vm3 = vcmp.eq.s32.totalorder %v166_v10, %v169_v9  ;;  %vm173_vm5 = vcmp.eq.s32.totalorder %v167_v11, %v169_v9  ;;  %vm171_vm6 = vcmp.eq.s32.totalorder %v165_v12, %v169_v9 }
  0x42   :  { %368 = vmatpush3.bf16.xpose.msk.msra.mxu0 %vm551_vm1, %v363_v6  ;;  %372 = vmatpush3.bf16.xpose.msk.msra.mxu1 %vm551_vm1, %v363_v6 }
  0x49   :  { %352 = vmatmul.mubr.msk.f32.vlgmr.msra.gmra.mrb[0].mxu0 %vm65_vm0, %v62_v2  ;;  %355 = vmatmul.mubr.msk.f32.vlgmr.msra.gmra.mrb[0].mxu1 %vm65_vm0, %v64_v5  ;;  %v283_v2 = vld [vmem:[#allocation4 + $0x8] sm:$0xff]  ;;  %v286_v5 = vsub.f32 %v282_v1, %v284_v3 }
  0x4a   :  { %v287_v6 = vsub.f32 %v283_v2, %v285_v4 }
  0x4b   :  { %v288_v7 = vmul.f32 %v286_v5, %v286_v5 }
  0x4c   :  { %v289_v8 = vmul.f32 %v287_v6, %v287_v6 }
  0x4e   :  { %v291_v9 = vadd.f32 %v289_v8, %v288_v7 }
 0x11c   :  { %v353_v13 = vpop.f32.mrb[0].mxu0  ;;  %v356_v14 = vpop.f32.mrb[0].mxu1 }
 0x11d   :  { %v192_v15 = vand.u32 2147483647, %v353_v13  ;;  %v194_v16 = vand.u32 2147483647, %v356_v14  ;;  %v144_v17 = vpop.f32.mrb[1].mxu0  ;;  %v154_v18 = vpop.f32.mrb[1].mxu1 }
 0x11e   :  { %v174_v19 = vsel %vm170_vm2, %v144_v17, 0.0  ;;  %v191_v20 = vand.u32 2147483647, %v144_v17  ;;  %v176_v21 = vsel %vm172_vm3, %v154_v18, 0.0  ;;  %v193_v22 = vand.u32 2147483647, %v154_v18 }
 0x11f   :  { %v196_v23 = vsel %vm178_vm4, %v192_v15, 0.0  ;;  %v185_v24 = vsel %vm178_vm4, %v176_v21, 0.0  ;;  %v179_v25 = vsel %vm178_vm4, %v174_v19, 0.0  ;;  %v177_v26 = vsel %vm173_vm5, %v356_v14, 0.0 }
 0x120   :  { %v195_v27 = vsel %vm178_vm4, %v191_v20, 0.0  ;;  %v198_v28 = vsel %vm178_vm4, %v193_v22, 0.0  ;;  %186 = vadd.xlane.f32.xlu1 %v185_v24  ;;  %180 = vadd.xlane.f32.xlu0 %v179_v25  ;;  %v175_v29 = vsel %vm171_vm6, %v353_v13, 0.0  ;;  %v188_v31 = vsel %vm178_vm4, %v177_v26, 0.0 }
 0x121   :  { %v197_v30 = vadd.f32 %v196_v23, %v195_v27  ;;  %v200_v32 = vsel %vm178_vm4, %v194_v16, 0.0  ;;  %v182_v33 = vsel %vm178_vm4, %v175_v29, 0.0 }
 0x123   :  { %v199_v34 = vadd.f32 %v198_v28, %v197_v30 }
 0x124   :  { %189 = vadd.xlane.f32.xlu1 %v188_v31  ;;  %183 = vadd.xlane.f32.xlu0 %v182_v33 }
 0x125   :  { %v201_v35 = vadd.f32 %v200_v32, %v199_v34 }
 0x128   :  { %202 = vadd.xlane.f32.xlu0 %v201_v35 }
 0x1ad   :  { %v583_v36 = vpop.xlane.xlu1 %186  ;;  %v585_v37 = vpop.xlane.xlu0 %180 }
 0x1ae   :  { %v211_v38 = vand.u32 2147483647, %v585_v37  ;;  %v213_v41 = vand.u32 2147483647, %v583_v36  ;;  %v234_v42 = vsel %vm215_vm7, %v585_v37, 0.0  ;;  %v237_v46 = vsel %vm215_vm7, %v583_v36, 0.0 }
 0x1b0   :  { %v216_v47 = vsel %vm215_vm7, %v211_v38, 0.0  ;;  %v219_v55 = vsel %vm215_vm7, %v213_v41, 0.0 }
 0x1b1   :  { %v588_v39 = vpop.xlane.xlu1 %189  ;;  %v184_v40 = vpop.xlane.xlu0 %183 }
 0x1b2   :  { %v212_v43 = vand.u32 2147483647, %v184_v40  ;;  %v235_v44 = vsel %vm215_vm7, %v184_v40, 0.0  ;;  %v214_v48 = vand.u32 2147483647, %v588_v39  ;;  %v239_v54 = vsel %vm215_vm7, %v588_v39, 0.0 }
 0x1b3   :  { %v236_v45 = vadd.f32 %v235_v44, %v234_v42 }
 0x1b4   :  { %v217_v49 = vsel %vm215_vm7, %v212_v43, 0.0  ;;  %v221_v59 = vsel %vm215_vm7, %v214_v48, 0.0 }
 0x1b5   :  { %v203_v50 = vpop.xlane.xlu0 %202  ;;  %v238_v51 = vadd.f32 %v237_v46, %v236_v45  ;;  %v218_v52 = vadd.f32 %v217_v49, %v216_v47 }
 0x1b6   :  { %v204_v53 = vrot.slane %v203_v50, 4 }
 0x1b7   :  { %v240_v56 = vadd.f32 %v239_v54, %v238_v51  ;;  %v220_v57 = vadd.f32 %v219_v55, %v218_v52 }
 0x1b8   :  { %v205_v58 = vadd.f32 %v204_v53, %v203_v50 }
 0x1b9   :  { %241 = vadd.xlane.f32.xlu0 %v240_v56  ;;  %v222_v60 = vadd.f32 %v221_v59, %v220_v57 }
 0x1ba   :  { %v206_v61 = vrot.slane %v205_v58, 2 }
 0x1bb   :  { %223 = vadd.xlane.f32.xlu1 %v222_v60 }
 0x1bc   :  { %v207_v62 = vadd.f32 %v206_v61, %v205_v58 }
 0x1bd   :  { %298 = vadd.xlane.f32.xlu0 %v291_v9 }
 0x1be   :  { %v208_v63 = vrot.slane %v207_v62, 1 }
 0x1c0   :  { %v209_v0 = vadd.f32 %v208_v63, %v207_v62 }
 0x1c2   :  { %373 = vpush %v209_v0 }
 0x1f3   :  { %s603_s2 = spop %373 }
 0x246   :  { %v242_v10 = vpop.xlane.xlu0 %241 }
 0x247   :  { %v243_v11 = vrot.slane %v242_v10, 4 }
 0x248   :  { %v224_v12 = vpop.xlane.xlu1 %223 }
 0x249   :  { %v244_v13 = vadd.f32 %v243_v11, %v242_v10  ;;  %v225_v14 = vrot.slane %v224_v12, 4 }
 0x24b   :  { %v245_v15 = vrot.slane %v244_v13, 2  ;;  %v226_v16 = vadd.f32 %v225_v14, %v224_v12 }
 0x24d   :  { %v227_v17 = vrot.slane %v226_v16, 2  ;;  %v246_v18 = vadd.f32 %v245_v15, %v244_v13 }
 0x24f   :  { %v228_v19 = vadd.f32 %v227_v17, %v226_v16  ;;  %v247_v20 = vrot.slane %v246_v18, 1 }
 0x251   :  { %v229_v21 = vrot.slane %v228_v19, 1  ;;  %v248_v23 = vadd.f32 %v247_v20, %v246_v18 }
 0x253   :  { %v230_v22 = vadd.f32 %v229_v21, %v228_v19 }
 0x255   :  { %375 = vpush %v230_v22 }
 0x256   :  { %377 = vpush %v248_v23 }
 0x286   :  { %s605_s21 = spop %375 }
 0x287   :  { %s232_s22 = ssub.f32 %s603_s2, %s605_s21  ;;  %s378_s23 = spop %377 }
 0x288   :  { %s250_s24 = smul.f32 0.03125, %s378_s23 }
 0x289   :  { %s233_s27 = smul.f32 0.0010080645, %s232_s22 }
 0x28a   :  { %v251_v24 = vstv %s250_s24 }
 0x28b   :  { %v252_v25 = vsub.f32 %v585_v37, %v251_v24  ;;  %v253_v26 = vsub.f32 %v184_v40, %v251_v24  ;;  %v254_v27 = vsub.f32 %v583_v36, %v251_v24  ;;  %v255_v28 = vsub.f32 %v588_v39, %v251_v24  ;;  %v299_v40 = vpop.xlane.xlu0 %298 }
 0x28c   :  { %v300_v36 = vrot.slane %v299_v40, 4 }
 0x28d   :  { %v256_v29 = vmul.f32 %v252_v25, %v252_v25  ;;  %v257_v30 = vmul.f32 %v253_v26, %v253_v26  ;;  %v258_v31 = vmul.f32 %v254_v27, %v254_v27  ;;  %v259_v32 = vmul.f32 %v255_v28, %v255_v28 }
 0x28e   :  { %v301_v43 = vadd.f32 %v300_v36, %v299_v40 }
 0x28f   :  { %v260_v33 = vsel %vm215_vm7, %v256_v29, 0.0  ;;  %v261_v34 = vsel %vm215_vm7, %v257_v30, 0.0  ;;  %v263_v38 = vsel %vm215_vm7, %v258_v31, 0.0  ;;  %v265_v42 = vsel %vm215_vm7, %v259_v32, 0.0 }
 0x290   :  { %v262_v35 = vadd.f32 %v261_v34, %v260_v33  ;;  %v302_v39 = vrot.slane %v301_v43, 2 }
 0x292   :  { %v264_v41 = vadd.f32 %v263_v38, %v262_v35  ;;  %v303_v46 = vadd.f32 %v302_v39, %v301_v43 }
 0x294   :  { %v266_v37 = vadd.f32 %v265_v42, %v264_v41  ;;  %v304_v49 = vrot.slane %v303_v46, 1 }
 0x296   :  { %267 = vadd.xlane.f32.xlu1 %v266_v37  ;;  %v305_v52 = vadd.f32 %v304_v49, %v303_v46 }
 0x323   :  { %v268_v44 = vpop.xlane.xlu1 %267 }
 0x324   :  { %v269_v45 = vrot.slane %v268_v44, 4 }
 0x326   :  { %v270_v47 = vadd.f32 %v269_v45, %v268_v44 }
 0x328   :  { %v271_v48 = vrot.slane %v270_v47, 2 }
 0x32a   :  { %v272_v50 = vadd.f32 %v271_v48, %v270_v47 }
 0x32c   :  { %v273_v51 = vrot.slane %v272_v50, 1 }
 0x32e   :  { %v274_v53 = vadd.f32 %v273_v51, %v272_v50 }
 0x330   :  { %379 = vpush %v274_v53 }
 0x331   :  { %381 = vpush %v305_v52 }
 0x361   :  { %s380_s25 = spop %379 }
 0x362   :  { %s276_s26 = smul.f32 0.032258064, %s380_s25  ;;  %s382_s29 = spop %381 }
 0x363   :  { %s307_s4 = smul.f32 0.00048828125, %s382_s29 }
 0x364   :  { %s277_s28 = smul.f32 0.1, %s276_s26 }
 0x366   :  { %s278_s30 = sadd.f32 %s277_s28, %s233_s27 }
 0x368   :  { %s279_s5 = smul.f32 0.5, %s278_s30 }
 0x36a   :  { %s309_s6 = sadd.f32 %s307_s4, %s279_s5 }
 0x36c   :  { %311 = sst [smem:[#allocation10]] %s309_s6 }
 0x36d   :  { %464 = shalt.err (!%p461_p12)
}
 0x36e   :  { %s476_s13 = smov [#allocation10]  }
 0x36f   :  { %319 = dma.smem_to_hbm %s476_s13, 16, %s634_s3, [#allocation6]  }
 0x370   :  { %469 = dma.done.wait [#allocation6], 16  }
 0x371   :  { %470 = vsyncadd [#allocation6], 4294967280 }
 0x372   :  { %323 = sfence }
 0x373   :  { %324 = vsyncpa [#allocation5], 1 }
 0x374   :  { %325 = vsyncpa [#allocation8], 1 }
 0x375   :  { %326 = vsyncpa [#allocation6], 1 }

</bundles_post_ra>
